<compile_context>
chip_gen: v5e
topology: v5e:2x2
jax: 0.10.0
libtpu: 0.0.40
codegen_flags: <defaults>
</compile_context>

<pallas_src>
import jax
import jax.numpy as jnp
from jax.experimental import pallas as pl
from jax.experimental.pallas import tpu as pltpu

LOOPS = 100  # number of split/append iterations in the original forward


def _pick_tile_m(m):
    # MXU-friendly row tiles (v6e/v7x: 2x256^2 MXU, v5e: 4x128^2); fall back
    # to the whole M for small / odd inputs.  Kept <= 512 so double-buffered
    # tiles stay well inside v7x's smaller (64 MiB) VMEM.
    for t in (512, 256, 128):
        if m % t == 0:
            return t
    return m


def _cat_mm_kernel(x1_ref, x2_ref, out_ref):
    n = x2_ref.shape[1]
    tm, padded_cols = out_ref.shape

    # Matmul on the MXU with f32 accumulation.
    c = jnp.dot(x1_ref[...], x2_ref[...],
                preferred_element_type=jnp.float32).astype(out_ref.dtype)

    # Three copies of C via direct slice stores (no concatenate: avoids XLU
    # lane-shift/select sequences and a 3x live-vreg footprint).  When
    # N % 128 == 0 these are unmasked lane-aligned vst.
    out_ref[:, 0:n] = c
    out_ref[:, n:2 * n] = c
    out_ref[:, 2 * n:3 * n] = c

    # Tail: 100 duplicates of C's last column, extended to also cover the
    # lane-alignment pad (pad is never read; cheaper than a zeros splat).
    tail = padded_cols - 3 * n
    out_ref[:, 3 * n:] = jnp.broadcast_to(c[:, n - 1:n], (tm, tail))


def cat_mm_slab(x1, x2, *, force_pallas=False):
    """Returns the padded (M, round_up(3N+100, 128)) slab.

    Valid data lives in columns [0, 3N+100): three concatenated copies of
    x1 @ x2 followed by 100 copies of its last column.  The trailing
    alignment columns are padding; slice them off lazily in the consumer.
    """
    M, K = x1.shape
    K2, N = x2.shape
    assert K == K2, f"inner dims must match, got {K} vs {K2}"

    out_dtype = jnp.result_type(x1.dtype, x2.dtype)
    out_cols = 3 * N + LOOPS
    padded_cols = pl.cdiv(out_cols, 128) * 128

    # Dispatch reality check (perf review): at tiny sizes the whole problem is
    # pallas_call launch overhead; let XLA fuse plain jnp ops instead.
    if not force_pallas and M * padded_cols < 128 * 1024:
        c = jnp.dot(x1, x2, preferred_element_type=jnp.float32).astype(out_dtype)
        last = jnp.broadcast_to(c[:, N - 1:N], (M, padded_cols - 3 * N))
        return jnp.concatenate([c, c, c, last], axis=1)

    tm = _pick_tile_m(M)
    grid = (M // tm,)

    # Rough per-step VMEM budget (double-buffered tiles); raise the scoped
    # limit only as far as needed, capped well under v7x's 64 MiB physical.
    bytes_per_step = 4 * (tm * K + tm * padded_cols + K * N)
    vmem_limit = min(max(2 * bytes_per_step + (1 << 20), 32 << 20), 48 << 20)

    return pl.pallas_call(
        _cat_mm_kernel,
        out_shape=jax.ShapeDtypeStruct((M, padded_cols), out_dtype),
        grid_spec=pltpu.PrefetchScalarGridSpec(
            num_scalar_prefetch=0,
            grid=grid,
            in_specs=[
                pl.BlockSpec((tm, K), lambda i: (i, 0)),   # row tile of x1
                pl.BlockSpec((K, N), lambda i: (0, 0)),    # x2 resident
            ],
            out_specs=pl.BlockSpec((tm, padded_cols), lambda i: (i, 0)),
        ),
        compiler_params=pltpu.CompilerParams(
            dimension_semantics=("parallel",),   # row tiles are independent
            vmem_limit_bytes=vmem_limit,
        ),
    )(x1, x2)


if __name__ == "__main__":
    key = jax.random.PRNGKey(0)
    k1, k2 = jax.random.split(key)
    # Small shapes consistent with torch.mm semantics: (M, K) @ (K, N).
    M, K, N = 8, 16, 8
    x1 = jax.random.normal(k1, (M, K), dtype=jnp.float32)
    x2 = jax.random.normal(k2, (K, N), dtype=jnp.float32)

    # Force the Pallas path so the kernel is actually exercised at test shapes.
    slab_padded = cat_mm_slab(x1, x2, force_pallas=True)
    jax.block_until_ready(slab_padded)

    # Correctness check against a plain-JAX reference (consumer-side slice).
    out_cols = 3 * N + LOOPS
    c_ref = x1 @ x2
    ref = jnp.concatenate([c_ref, c_ref, c_ref] + [c_ref[:, -1:]] * LOOPS,
                          axis=1)
    got = slab_padded[:, :out_cols]
    assert slab_padded.shape[1] % 128 == 0
    assert got.shape == (M, out_cols)
    assert jnp.allclose(got, ref, atol=1e-5, rtol=1e-5)

    print("KERNEL_OK")
</pallas_src>

<mosaic_0001>
module attributes {stable_mosaic.version = 11 : i64} {
  func.func @_cat_mm_kernel(%arg0: i32, %arg1: memref<8x16xf32, #tpu.memory_space<vmem>>, %arg2: memref<16x8xf32, #tpu.memory_space<vmem>>, %arg3: memref<8x128xf32, #tpu.memory_space<vmem>>) attributes {dimension_semantics = [#tpu.dimension_semantics<parallel>], iteration_bounds = array<i64: 1>, scalar_prefetch = 0 : i64, scratch_operands = 0 : i64, tpu.core_type = #tpu.core_type<tc>, window_params = [{transform_indices = @transform_0, window_bounds = array<i64: 8, 16>}, {pipeline_mode = #tpu.pipeline_mode<synchronous>, transform_indices = @transform_1, window_bounds = array<i64: 16, 8>}, {transform_indices = @transform_2, window_bounds = array<i64: 8, 128>}]} {
    %c0 = arith.constant 0 : index
    %c0_0 = arith.constant 0 : index
    %0 = vector.load %arg1[%c0, %c0_0] : memref<8x16xf32, #tpu.memory_space<vmem>>, vector<8x16xf32>
    %c0_1 = arith.constant 0 : index
    %c0_2 = arith.constant 0 : index
    %1 = vector.load %arg2[%c0_1, %c0_2] : memref<16x8xf32, #tpu.memory_space<vmem>>, vector<16x8xf32>
    %cst = arith.constant dense<0.000000e+00> : vector<8x8xf32>
    %2 = tpu.matmul %0, %1, %cst {dimension_numbers = #tpu.dot_dimension_numbers<[1], [0], [0], [1], [0, 0, 1, 1], [], []>} : vector<8x16xf32>, vector<16x8xf32>, vector<8x8xf32> -> vector<8x8xf32>
    %c0_3 = arith.constant 0 : index
    %c0_4 = arith.constant 0 : index
    %3 = vector.load %arg3[%c0_3, %c0_4] : memref<8x128xf32, #tpu.memory_space<vmem>>, vector<8x8xf32>
    tpu.vector_store %arg3[%c0_3, %c0_4], %2 {strides = array<i32>} : memref<8x128xf32, #tpu.memory_space<vmem>>, vector<8x8xf32>,
    %c0_5 = arith.constant 0 : index
    %c8 = arith.constant 8 : index
    %4 = vector.load %arg3[%c0_5, %c8] : memref<8x128xf32, #tpu.memory_space<vmem>>, vector<8x8xf32>
    tpu.vector_store %arg3[%c0_5, %c8], %2 {strides = array<i32>} : memref<8x128xf32, #tpu.memory_space<vmem>>, vector<8x8xf32>,
    %c0_6 = arith.constant 0 : index
    %c16 = arith.constant 16 : index
    %5 = vector.load %arg3[%c0_6, %c16] : memref<8x128xf32, #tpu.memory_space<vmem>>, vector<8x8xf32>
    tpu.vector_store %arg3[%c0_6, %c16], %2 {strides = array<i32>} : memref<8x128xf32, #tpu.memory_space<vmem>>, vector<8x8xf32>,
    %6 = vector.extract_strided_slice %2 {offsets = [0, 7], sizes = [8, 1], strides = [1, 1]} : vector<8x8xf32> to vector<8x1xf32>
    %7 = vector.shape_cast %6 : vector<8x1xf32> to vector<8x1xf32>
    %8 = vector.broadcast %7 : vector<8x1xf32> to vector<8x104xf32>
    %c0_7 = arith.constant 0 : index
    %c24 = arith.constant 24 : index
    %9 = vector.load %arg3[%c0_7, %c24] : memref<8x128xf32, #tpu.memory_space<vmem>>, vector<8x104xf32>
    tpu.vector_store %arg3[%c0_7, %c24], %8 {strides = array<i32>} : memref<8x128xf32, #tpu.memory_space<vmem>>, vector<8x104xf32>,
    return
  }
  func.func @transform_0(%arg0: i32) -> (i32, i32) {
    %c0_i32 = arith.constant 0 : i32
    %c0_i32_0 = arith.constant 0 : i32
    return %arg0, %c0_i32 : i32, i32
  }
  func.func @transform_1(%arg0: i32) -> (i32, i32) {
    %c0_i32 = arith.constant 0 : i32
    %c0_i32_0 = arith.constant 0 : i32
    %c0_i32_1 = arith.constant 0 : i32
    return %c0_i32, %c0_i32_0 : i32, i32
  }
  func.func @transform_2(%arg0: i32) -> (i32, i32) {
    %c0_i32 = arith.constant 0 : i32
    %c0_i32_0 = arith.constant 0 : i32
    return %arg0, %c0_i32 : i32, i32
  }
}

</mosaic_0001>

<bundles_post_ra>
// kernel: tpu_custom_call.1
= control target key start
LH: loop header
LB: loop body
LE: loop exit
PB: predicated region body
PF: predicated region fallthrough
CT: control target
= control target key end

     0   :  { %vm15_vm0 = vcmask 130048   ;;  %v107_v3 = vmov 7   ;;  %s138_s0 = inlined_call_operand.vmem [shape: f32[8,16], index: 0, kind: input, shape index: {}]   ;;  %s139_s1 = inlined_call_operand.vmem [shape: f32[16,8], index: 1, kind: input, shape index: {}]   ;;  %s140_s2 = inlined_call_operand.hbm [shape: f32[8,128], index: 2, kind: output, shape index: {}]  }
   0x1   :  { %v14_v0 = vld [vmem:[%s139_s1 + $0x8] sm:$0xff]  ;;  %v13_v1 = vld [vmem:[%s139_s1] sm:$0xff]  ;;  %79 = vset.pattern.permute.xlu1 %v107_v3 }
   0x2   :  { %33 = vmatpush.msra.mxu0 %v14_v0  ;;  %v12_v2 = vld [vmem:[%s138_s0] sm:$0xff] }
   0x3   :  { %7 = vsyncpa [#allocation3], 0  ;;  %80 = vset.pattern.permute.xlu0 %v107_v3  ;;  %vm39_vm1 = vcmask 64512   ;;  %s108_s15 = smov 8   ;;  %s109_s16 = smov 16   ;;  %vm45_vm2 = vcmask 130112  }
   0x4   :  { %34 = vmatpush.msra.mxu0 %v13_v1  ;;  %s110_s1 = smov [#allocation2]   ;;  %s65_s19 = sshll.u32 %s140_s2, 4  ;;  %vm50_vm3 = vcmask 195712   ;;  %vm56_vm4 = vcmask 1047744   ;;  %s66_s19 = int_to_ptr.hbm [resolvable:$true] %s65_s19 }
   0x5   :  { %74 = vmatmul.msk.f32.vlgmr.msra.gmra.mxu0 %vm15_vm0, %v12_v2  ;;  %s63_s0 = sshll.u32 %s110_s1, 4  ;;  %s64_s0 = int_to_ptr.vmem [resolvable:$true] %s63_s0 }
  0x82   :  { %v36_v4 = vpop.f32.mrf.mxu0 }
  0x83   :  { %40 = vst.msk [vmem:[#allocation2] sm:$0xff] %vm39_vm1, %v36_v4  ;;  %53 = vperm.xlu1 %79, %v36_v4   ;;  %42 = vrot.lane.b32.xlu0 %v36_v4, %s108_s15 }
  0x8b   :  { %47 = vrot.lane.b32.xlu0 %v36_v4, %s109_s16 }
  0xf5   :  { %v43_v5 = vpop.permute.xlu0 %42  ;;  %v54_v7 = vpop.permute.xlu1 %53 }
  0xf6   :  { %46 = vst.msk [vmem:[#allocation2] sm:$0xff] %vm45_vm2, %v43_v5 }
  0xfd   :  { %v48_v6 = vpop.permute.xlu0 %47 }
  0xfe   :  { %51 = vst.msk [vmem:[#allocation2] sm:$0xff] %vm50_vm3, %v48_v6 }
  0xff   :  { %57 = vst.msk [vmem:[#allocation2] sm:$0xff] %vm56_vm4, %v54_v7 }
 0x100   :  { %68 = dma.vmem_to_hbm [thread:$0]  %s64_s0, 128, %s66_s19, [#allocation3]  }
 0x101   :  { %105 = dma.done.wait [#allocation3], 128  }
 0x102   :  { %106 = vsyncadd [#allocation3], 4294967168 }
 0x103   :  { %73 = vsyncpa [#allocation3], 1 }

</bundles_post_ra>
